<compile_context>
chip_gen: v6e
topology: v6e:2x2x1
jax: 0.10.0
libtpu: 0.0.40
codegen_flags: <defaults>
</compile_context>

<pallas_src>
import functools

import jax
import jax.numpy as jnp
from jax.experimental import pallas as pl
from jax.experimental.pallas import tpu as pltpu


def tcn_last_step_kernel(*refs, num_layers: int):
    """Fused TCN forward on the last-timestep slab of one batch block.

    refs layout (all VMEM blocks):
      refs[0]                   : x_last  (B_blk, C_in)        f32
      refs[1+4l .. 4+4l]        : layer l: w_tap0 (C_prev, C_hid) f32,
                                           b_conv (1, C_hid)      f32,
                                           w_pw   (C_hid, C_hid)  f32,
                                           b_pw   (1, C_hid)      f32
      refs[1+4L], refs[2+4L]    : w_fc (C_hid, C_out), b_fc (1, C_out)
      refs[3+4L]                : out  (B_blk, C_out)
    """
    x_ref = refs[0]
    wfc_ref = refs[1 + 4 * num_layers]
    bfc_ref = refs[2 + 4 * num_layers]
    o_ref = refs[3 + 4 * num_layers]

    h = x_ref[...]                                             # (B_blk, C_in) f32
    for l in range(num_layers):
        w_ref, bc_ref, wp_ref, bp_ref = refs[1 + 4 * l: 5 + 4 * l]
        # Dilated conv collapsed to its tap-0 contribution on the last row.
        h = jnp.maximum(
            jnp.dot(h, w_ref[...], preferred_element_type=jnp.float32)
            + bc_ref[...], 0.0)
        # TODO(synk): Dropout is identity at inference.
        # weight-normed 1x1 conv (reparam resolved in glue) + ReLU.
        h = jnp.maximum(
            jnp.dot(h, wp_ref[...], preferred_element_type=jnp.float32)
            + bp_ref[...], 0.0)

    # Final Linear, batched over the whole block (no M=1 MXU push/pop).
    o_ref[...] = (jnp.dot(h, wfc_ref[...], preferred_element_type=jnp.float32)
                  + bfc_ref[...]).astype(o_ref.dtype)


def _round_up(x, m):
    return ((x + m - 1) // m) * m


def pack_kernel_operands(layer_params, fc_params):
    """PyTorch-layout params -> kernel-ready matmul operands (all f32)."""
    ops = []
    for p in layer_params:
        ops.append(jnp.asarray(p['w_conv'][:, :, 0].T, jnp.float32))   # tap-0 (C_prev, C_hid)
        ops.append(jnp.asarray(p['b_conv'][None, :], jnp.float32))     # (1, C_hid)
        ops.append(jnp.asarray(p['w_pw'].T, jnp.float32))              # (C_hid, C_hid)
        ops.append(jnp.asarray(p['b_pw'][None, :], jnp.float32))       # (1, C_hid)
    ops.append(jnp.asarray(fc_params['w'].T, jnp.float32))             # (C_hid, C_out)
    ops.append(jnp.asarray(fc_params['b'][None, :], jnp.float32))      # (1, C_out)
    return ops


def tcn4emg_forward(x, kernel_operands, *, batch_block=512):
    """x: (B, T, C) — the tensor the PyTorch module receives before permute."""
    b, _, c_in = x.shape
    num_layers = (len(kernel_operands) - 2) // 4
    out_dim = kernel_operands[-1].shape[-1]

    # Only the last timestep reaches the output (see module docstring); this
    # single XLA slice is the only wrapper-side data movement.
    x_last = x[:, -1, :]                                       # (B, C_in)

    # 8-aligned (sublane-aligned) batch block; pad batch so every block is
    # full.  Grid over blocks is "parallel" (v7x megacore sharding).
    bb = min(batch_block, _round_up(b, 8))
    b_pad = _round_up(b, bb)
    if b_pad != b:
        x_last = jnp.pad(x_last, ((0, b_pad - b), (0, 0)))

    in_specs = [pl.BlockSpec((bb, c_in), lambda i: (i, 0))]
    for arr in kernel_operands:
        # Whole-array VMEM block, same block for every grid step (no re-fetch).
        in_specs.append(pl.BlockSpec(arr.shape, lambda i, _nd=arr.ndim: (0,) * _nd))

    kern = functools.partial(tcn_last_step_kernel, num_layers=num_layers)
    y = pl.pallas_call(
        kern,
        out_shape=jax.ShapeDtypeStruct((b_pad, out_dim), jnp.float32),
        grid=(b_pad // bb,),
        in_specs=in_specs,
        out_specs=pl.BlockSpec((bb, out_dim), lambda i: (i, 0)),
        compiler_params=pltpu.CompilerParams(
            dimension_semantics=("parallel",)),
    )(x_last, *kernel_operands)
    return y[:b]                                               # (B, out_dim)


def init_params(key, input_dim, hidden_dim, output_dim, num_layers, ksize):
    """Deterministic synthetic parameters in the PyTorch module's shapes.
    The weight_norm reparam (w = g * v / ||v||, g initialised to ||v||) is
    resolved here since it is a fixed weight at inference time."""
    layer_params = []
    c_in = input_dim
    dilation = 1
    for _ in range(num_layers):
        key, k1, k2, k3, k4 = jax.random.split(key, 5)
        w_conv = jax.random.normal(k1, (hidden_dim, c_in, ksize), jnp.float32) * 0.1
        b_conv = jax.random.normal(k2, (hidden_dim,), jnp.float32) * 0.1
        v = jax.random.normal(k3, (hidden_dim, hidden_dim, 1), jnp.float32) * 0.1
        v_norm = jnp.sqrt(jnp.sum(v * v, axis=(1, 2), keepdims=True))
        g = v_norm                                 # PyTorch weight_norm init: g = ||v||
        w_pw = (g * v / v_norm)[:, :, 0]           # (C_out, C_in)
        b_pw = jax.random.normal(k4, (hidden_dim,), jnp.float32) * 0.1
        layer_params.append(dict(w_conv=w_conv, b_conv=b_conv, w_pw=w_pw,
                                 b_pw=b_pw, dilation=dilation))
        c_in = hidden_dim
        dilation *= 2

    key, k1, k2 = jax.random.split(key, 3)
    fc_params = dict(
        w=jax.random.normal(k1, (output_dim, hidden_dim), jnp.float32) * 0.1,
        b=jax.random.normal(k2, (output_dim,), jnp.float32) * 0.1)
    return layer_params, fc_params


def reference_forward_full(x, layer_params, fc_params, *, ksize):
    """Full-sequence pure-JAX reference (no last-timestep pruning), mirroring
    the PyTorch module layer by layer in channels-last layout."""
    h = x.astype(jnp.float32)                                  # (B, T, C)
    for p in layer_params:
        d = int(p['dilation'])
        pad = (ksize - 1) * d
        w, b = p['w_conv'], p['b_conv']                        # (C_out, C_in, K), (C_out,)
        bsz, t_in, _ = h.shape
        t_out = t_in + pad                                     # = t_in + 2*pad - d*(k-1)
        hp = jnp.pad(h, ((0, 0), (pad, pad), (0, 0)))
        acc = jnp.zeros((bsz, t_out, w.shape[0]), jnp.float32)
        for j in range(ksize):                                 # cross-correlation taps
            acc = acc + jnp.einsum('btc,oc->bto',
                                   hp[:, j * d:j * d + t_out, :], w[:, :, j])
        h = jax.nn.relu(acc + b[None, None, :])
        h = jax.nn.relu(jnp.einsum('btc,oc->bto', h, p['w_pw'])
                        + p['b_pw'][None, None, :])
    return h[:, -1, :] @ fc_params['w'].T + fc_params['b'][None, :]


if __name__ == "__main__":
    B, T, C = 2, 16, 4                     # batch, seq length, num_channels
    hidden_dim, output_dim = 32, 8
    num_layers, ksize = 4, 3

    key = jax.random.PRNGKey(0)
    key, kx, kp = jax.random.split(key, 3)
    x = jax.random.normal(kx, (B, T, C), jnp.float32)
    layer_params, fc_params = init_params(kp, C, hidden_dim, output_dim,
                                          num_layers, ksize)

    kernel_operands = pack_kernel_operands(layer_params, fc_params)
    y = tcn4emg_forward(x, kernel_operands)
    y = jax.block_until_ready(y)

    # Full-sequence reference confirms the last-timestep pruning is exact.
    y_ref = jax.block_until_ready(
        reference_forward_full(x, layer_params, fc_params, ksize=ksize))

    assert y.shape == (B, output_dim), y.shape
    assert bool(jnp.all(jnp.isfinite(y)))
    assert bool(jnp.allclose(y, y_ref, rtol=5e-2, atol=5e-3)), (y, y_ref)
    print("KERNEL_OK")
</pallas_src>

<mosaic_0001>
module attributes {stable_mosaic.version = 11 : i64} {
  func.func @tcn_last_step_kernel(%arg0: i32, %arg1: memref<8x4xf32, #tpu.memory_space<vmem>>, %arg2: memref<4x32xf32, #tpu.memory_space<vmem>>, %arg3: memref<1x32xf32, #tpu.memory_space<vmem>>, %arg4: memref<32x32xf32, #tpu.memory_space<vmem>>, %arg5: memref<1x32xf32, #tpu.memory_space<vmem>>, %arg6: memref<32x32xf32, #tpu.memory_space<vmem>>, %arg7: memref<1x32xf32, #tpu.memory_space<vmem>>, %arg8: memref<32x32xf32, #tpu.memory_space<vmem>>, %arg9: memref<1x32xf32, #tpu.memory_space<vmem>>, %arg10: memref<32x32xf32, #tpu.memory_space<vmem>>, %arg11: memref<1x32xf32, #tpu.memory_space<vmem>>, %arg12: memref<32x32xf32, #tpu.memory_space<vmem>>, %arg13: memref<1x32xf32, #tpu.memory_space<vmem>>, %arg14: memref<32x32xf32, #tpu.memory_space<vmem>>, %arg15: memref<1x32xf32, #tpu.memory_space<vmem>>, %arg16: memref<32x32xf32, #tpu.memory_space<vmem>>, %arg17: memref<1x32xf32, #tpu.memory_space<vmem>>, %arg18: memref<32x8xf32, #tpu.memory_space<vmem>>, %arg19: memref<1x8xf32, #tpu.memory_space<vmem>>, %arg20: memref<8x8xf32, #tpu.memory_space<vmem>>) attributes {dimension_semantics = [#tpu.dimension_semantics<parallel>], iteration_bounds = array<i64: 1>, scalar_prefetch = 0 : i64, scratch_operands = 0 : i64, tpu.core_type = #tpu.core_type<tc>, window_params = [{transform_indices = @transform_0, window_bounds = array<i64: 8, 4>}, {pipeline_mode = #tpu.pipeline_mode<synchronous>, transform_indices = @transform_1, window_bounds = array<i64: 4, 32>}, {pipeline_mode = #tpu.pipeline_mode<synchronous>, transform_indices = @transform_2, window_bounds = array<i64: 1, 32>}, {pipeline_mode = #tpu.pipeline_mode<synchronous>, transform_indices = @transform_3, window_bounds = array<i64: 32, 32>}, {pipeline_mode = #tpu.pipeline_mode<synchronous>, transform_indices = @transform_4, window_bounds = array<i64: 1, 32>}, {pipeline_mode = #tpu.pipeline_mode<synchronous>, transform_indices = @transform_5, window_bounds = array<i64: 32, 32>}, {pipeline_mode = #tpu.pipeline_mode<synchronous>, transform_indices = @transform_6, window_bounds = array<i64: 1, 32>}, {pipeline_mode = #tpu.pipeline_mode<synchronous>, transform_indices = @transform_7, window_bounds = array<i64: 32, 32>}, {pipeline_mode = #tpu.pipeline_mode<synchronous>, transform_indices = @transform_8, window_bounds = array<i64: 1, 32>}, {pipeline_mode = #tpu.pipeline_mode<synchronous>, transform_indices = @transform_9, window_bounds = array<i64: 32, 32>}, {pipeline_mode = #tpu.pipeline_mode<synchronous>, transform_indices = @transform_10, window_bounds = array<i64: 1, 32>}, {pipeline_mode = #tpu.pipeline_mode<synchronous>, transform_indices = @transform_11, window_bounds = array<i64: 32, 32>}, {pipeline_mode = #tpu.pipeline_mode<synchronous>, transform_indices = @transform_12, window_bounds = array<i64: 1, 32>}, {pipeline_mode = #tpu.pipeline_mode<synchronous>, transform_indices = @transform_13, window_bounds = array<i64: 32, 32>}, {pipeline_mode = #tpu.pipeline_mode<synchronous>, transform_indices = @transform_14, window_bounds = array<i64: 1, 32>}, {pipeline_mode = #tpu.pipeline_mode<synchronous>, transform_indices = @transform_15, window_bounds = array<i64: 32, 32>}, {pipeline_mode = #tpu.pipeline_mode<synchronous>, transform_indices = @transform_16, window_bounds = array<i64: 1, 32>}, {pipeline_mode = #tpu.pipeline_mode<synchronous>, transform_indices = @transform_17, window_bounds = array<i64: 32, 8>}, {pipeline_mode = #tpu.pipeline_mode<synchronous>, transform_indices = @transform_18, window_bounds = array<i64: 1, 8>}, {transform_indices = @transform_19, window_bounds = array<i64: 8, 8>}]} {
    %c0 = arith.constant 0 : index
    %c0_0 = arith.constant 0 : index
    %0 = vector.load %arg1[%c0, %c0_0] : memref<8x4xf32, #tpu.memory_space<vmem>>, vector<8x4xf32>
    %c0_1 = arith.constant 0 : index
    %c0_2 = arith.constant 0 : index
    %1 = vector.load %arg2[%c0_1, %c0_2] : memref<4x32xf32, #tpu.memory_space<vmem>>, vector<4x32xf32>
    %cst = arith.constant dense<0.000000e+00> : vector<8x32xf32>
    %2 = tpu.matmul %0, %1, %cst {dimension_numbers = #tpu.dot_dimension_numbers<[1], [0], [0], [1], [0, 0, 1, 1], [], []>} : vector<8x4xf32>, vector<4x32xf32>, vector<8x32xf32> -> vector<8x32xf32>
    %c0_3 = arith.constant 0 : index
    %c0_4 = arith.constant 0 : index
    %3 = vector.load %arg3[%c0_3, %c0_4] : memref<1x32xf32, #tpu.memory_space<vmem>>, vector<1x32xf32>
    %4 = vector.broadcast %3 : vector<1x32xf32> to vector<8x32xf32>
    %5 = arith.addf %2, %4 : vector<8x32xf32>
    %cst_5 = arith.constant 0.000000e+00 : f32
    %6 = vector.broadcast %cst_5 : f32 to vector<8x32xf32>
    %7 = arith.maximumf %5, %6 : vector<8x32xf32>
    %c0_6 = arith.constant 0 : index
    %c0_7 = arith.constant 0 : index
    %8 = vector.load %arg4[%c0_6, %c0_7] : memref<32x32xf32, #tpu.memory_space<vmem>>, vector<32x32xf32>
    %cst_8 = arith.constant dense<0.000000e+00> : vector<8x32xf32>
    %9 = tpu.matmul %7, %8, %cst_8 {dimension_numbers = #tpu.dot_dimension_numbers<[1], [0], [0], [1], [0, 0, 1, 1], [], []>} : vector<8x32xf32>, vector<32x32xf32>, vector<8x32xf32> -> vector<8x32xf32>
    %c0_9 = arith.constant 0 : index
    %c0_10 = arith.constant 0 : index
    %10 = vector.load %arg5[%c0_9, %c0_10] : memref<1x32xf32, #tpu.memory_space<vmem>>, vector<1x32xf32>
    %11 = vector.broadcast %10 : vector<1x32xf32> to vector<8x32xf32>
    %12 = arith.addf %9, %11 : vector<8x32xf32>
    %cst_11 = arith.constant 0.000000e+00 : f32
    %13 = vector.broadcast %cst_11 : f32 to vector<8x32xf32>
    %14 = arith.maximumf %12, %13 : vector<8x32xf32>
    %c0_12 = arith.constant 0 : index
    %c0_13 = arith.constant 0 : index
    %15 = vector.load %arg6[%c0_12, %c0_13] : memref<32x32xf32, #tpu.memory_space<vmem>>, vector<32x32xf32>
    %cst_14 = arith.constant dense<0.000000e+00> : vector<8x32xf32>
    %16 = tpu.matmul %14, %15, %cst_14 {dimension_numbers = #tpu.dot_dimension_numbers<[1], [0], [0], [1], [0, 0, 1, 1], [], []>} : vector<8x32xf32>, vector<32x32xf32>, vector<8x32xf32> -> vector<8x32xf32>
    %c0_15 = arith.constant 0 : index
    %c0_16 = arith.constant 0 : index
    %17 = vector.load %arg7[%c0_15, %c0_16] : memref<1x32xf32, #tpu.memory_space<vmem>>, vector<1x32xf32>
    %18 = vector.broadcast %17 : vector<1x32xf32> to vector<8x32xf32>
    %19 = arith.addf %16, %18 : vector<8x32xf32>
    %cst_17 = arith.constant 0.000000e+00 : f32
    %20 = vector.broadcast %cst_17 : f32 to vector<8x32xf32>
    %21 = arith.maximumf %19, %20 : vector<8x32xf32>
    %c0_18 = arith.constant 0 : index
    %c0_19 = arith.constant 0 : index
    %22 = vector.load %arg8[%c0_18, %c0_19] : memref<32x32xf32, #tpu.memory_space<vmem>>, vector<32x32xf32>
    %cst_20 = arith.constant dense<0.000000e+00> : vector<8x32xf32>
    %23 = tpu.matmul %21, %22, %cst_20 {dimension_numbers = #tpu.dot_dimension_numbers<[1], [0], [0], [1], [0, 0, 1, 1], [], []>} : vector<8x32xf32>, vector<32x32xf32>, vector<8x32xf32> -> vector<8x32xf32>
    %c0_21 = arith.constant 0 : index
    %c0_22 = arith.constant 0 : index
    %24 = vector.load %arg9[%c0_21, %c0_22] : memref<1x32xf32, #tpu.memory_space<vmem>>, vector<1x32xf32>
    %25 = vector.broadcast %24 : vector<1x32xf32> to vector<8x32xf32>
    %26 = arith.addf %23, %25 : vector<8x32xf32>
    %cst_23 = arith.constant 0.000000e+00 : f32
    %27 = vector.broadcast %cst_23 : f32 to vector<8x32xf32>
    %28 = arith.maximumf %26, %27 : vector<8x32xf32>
    %c0_24 = arith.constant 0 : index
    %c0_25 = arith.constant 0 : index
    %29 = vector.load %arg10[%c0_24, %c0_25] : memref<32x32xf32, #tpu.memory_space<vmem>>, vector<32x32xf32>
    %cst_26 = arith.constant dense<0.000000e+00> : vector<8x32xf32>
    %30 = tpu.matmul %28, %29, %cst_26 {dimension_numbers = #tpu.dot_dimension_numbers<[1], [0], [0], [1], [0, 0, 1, 1], [], []>} : vector<8x32xf32>, vector<32x32xf32>, vector<8x32xf32> -> vector<8x32xf32>
    %c0_27 = arith.constant 0 : index
    %c0_28 = arith.constant 0 : index
    %31 = vector.load %arg11[%c0_27, %c0_28] : memref<1x32xf32, #tpu.memory_space<vmem>>, vector<1x32xf32>
    %32 = vector.broadcast %31 : vector<1x32xf32> to vector<8x32xf32>
    %33 = arith.addf %30, %32 : vector<8x32xf32>
    %cst_29 = arith.constant 0.000000e+00 : f32
    %34 = vector.broadcast %cst_29 : f32 to vector<8x32xf32>
    %35 = arith.maximumf %33, %34 : vector<8x32xf32>
    %c0_30 = arith.constant 0 : index
    %c0_31 = arith.constant 0 : index
    %36 = vector.load %arg12[%c0_30, %c0_31] : memref<32x32xf32, #tpu.memory_space<vmem>>, vector<32x32xf32>
    %cst_32 = arith.constant dense<0.000000e+00> : vector<8x32xf32>
    %37 = tpu.matmul %35, %36, %cst_32 {dimension_numbers = #tpu.dot_dimension_numbers<[1], [0], [0], [1], [0, 0, 1, 1], [], []>} : vector<8x32xf32>, vector<32x32xf32>, vector<8x32xf32> -> vector<8x32xf32>
    %c0_33 = arith.constant 0 : index
    %c0_34 = arith.constant 0 : index
    %38 = vector.load %arg13[%c0_33, %c0_34] : memref<1x32xf32, #tpu.memory_space<vmem>>, vector<1x32xf32>
    %39 = vector.broadcast %38 : vector<1x32xf32> to vector<8x32xf32>
    %40 = arith.addf %37, %39 : vector<8x32xf32>
    %cst_35 = arith.constant 0.000000e+00 : f32
    %41 = vector.broadcast %cst_35 : f32 to vector<8x32xf32>
    %42 = arith.maximumf %40, %41 : vector<8x32xf32>
    %c0_36 = arith.constant 0 : index
    %c0_37 = arith.constant 0 : index
    %43 = vector.load %arg14[%c0_36, %c0_37] : memref<32x32xf32, #tpu.memory_space<vmem>>, vector<32x32xf32>
    %cst_38 = arith.constant dense<0.000000e+00> : vector<8x32xf32>
    %44 = tpu.matmul %42, %43, %cst_38 {dimension_numbers = #tpu.dot_dimension_numbers<[1], [0], [0], [1], [0, 0, 1, 1], [], []>} : vector<8x32xf32>, vector<32x32xf32>, vector<8x32xf32> -> vector<8x32xf32>
    %c0_39 = arith.constant 0 : index
    %c0_40 = arith.constant 0 : index
    %45 = vector.load %arg15[%c0_39, %c0_40] : memref<1x32xf32, #tpu.memory_space<vmem>>, vector<1x32xf32>
    %46 = vector.broadcast %45 : vector<1x32xf32> to vector<8x32xf32>
    %47 = arith.addf %44, %46 : vector<8x32xf32>
    %cst_41 = arith.constant 0.000000e+00 : f32
    %48 = vector.broadcast %cst_41 : f32 to vector<8x32xf32>
    %49 = arith.maximumf %47, %48 : vector<8x32xf32>
    %c0_42 = arith.constant 0 : index
    %c0_43 = arith.constant 0 : index
    %50 = vector.load %arg16[%c0_42, %c0_43] : memref<32x32xf32, #tpu.memory_space<vmem>>, vector<32x32xf32>
    %cst_44 = arith.constant dense<0.000000e+00> : vector<8x32xf32>
    %51 = tpu.matmul %49, %50, %cst_44 {dimension_numbers = #tpu.dot_dimension_numbers<[1], [0], [0], [1], [0, 0, 1, 1], [], []>} : vector<8x32xf32>, vector<32x32xf32>, vector<8x32xf32> -> vector<8x32xf32>
    %c0_45 = arith.constant 0 : index
    %c0_46 = arith.constant 0 : index
    %52 = vector.load %arg17[%c0_45, %c0_46] : memref<1x32xf32, #tpu.memory_space<vmem>>, vector<1x32xf32>
    %53 = vector.broadcast %52 : vector<1x32xf32> to vector<8x32xf32>
    %54 = arith.addf %51, %53 : vector<8x32xf32>
    %cst_47 = arith.constant 0.000000e+00 : f32
    %55 = vector.broadcast %cst_47 : f32 to vector<8x32xf32>
    %56 = arith.maximumf %54, %55 : vector<8x32xf32>
    %c0_48 = arith.constant 0 : index
    %c0_49 = arith.constant 0 : index
    %57 = vector.load %arg18[%c0_48, %c0_49] : memref<32x8xf32, #tpu.memory_space<vmem>>, vector<32x8xf32>
    %cst_50 = arith.constant dense<0.000000e+00> : vector<8x8xf32>
    %58 = tpu.matmul %56, %57, %cst_50 {dimension_numbers = #tpu.dot_dimension_numbers<[1], [0], [0], [1], [0, 0, 1, 1], [], []>} : vector<8x32xf32>, vector<32x8xf32>, vector<8x8xf32> -> vector<8x8xf32>
    %c0_51 = arith.constant 0 : index
    %c0_52 = arith.constant 0 : index
    %59 = vector.load %arg19[%c0_51, %c0_52] : memref<1x8xf32, #tpu.memory_space<vmem>>, vector<1x8xf32>
    %60 = vector.broadcast %59 : vector<1x8xf32> to vector<8x8xf32>
    %61 = arith.addf %58, %60 : vector<8x8xf32>
    %c0_53 = arith.constant 0 : index
    %c0_54 = arith.constant 0 : index
    %62 = vector.load %arg20[%c0_53, %c0_54] : memref<8x8xf32, #tpu.memory_space<vmem>>, vector<8x8xf32>
    tpu.vector_store %arg20[%c0_53, %c0_54], %61 {strides = array<i32>} : memref<8x8xf32, #tpu.memory_space<vmem>>, vector<8x8xf32>,
    return
  }
  func.func @transform_0(%arg0: i32) -> (i32, i32) {
    %c0_i32 = arith.constant 0 : i32
    %c0_i32_0 = arith.constant 0 : i32
    return %arg0, %c0_i32 : i32, i32
  }
  func.func @transform_1(%arg0: i32) -> (i32, i32) {
    %c0_i32 = arith.constant 0 : i32
    %c0_i32_0 = arith.constant 0 : i32
    %c0_i32_1 = arith.constant 0 : i32
    return %c0_i32, %c0_i32_0 : i32, i32
  }
  func.func @transform_2(%arg0: i32) -> (i32, i32) {
    %c0_i32 = arith.constant 0 : i32
    %c0_i32_0 = arith.constant 0 : i32
    %c0_i32_1 = arith.constant 0 : i32
    return %c0_i32, %c0_i32_0 : i32, i32
  }
  func.func @transform_3(%arg0: i32) -> (i32, i32) {
    %c0_i32 = arith.constant 0 : i32
    %c0_i32_0 = arith.constant 0 : i32
    %c0_i32_1 = arith.constant 0 : i32
    return %c0_i32, %c0_i32_0 : i32, i32
  }
  func.func @transform_4(%arg0: i32) -> (i32, i32) {
    %c0_i32 = arith.constant 0 : i32
    %c0_i32_0 = arith.constant 0 : i32
    %c0_i32_1 = arith.constant 0 : i32
    return %c0_i32, %c0_i32_0 : i32, i32
  }
  func.func @transform_5(%arg0: i32) -> (i32, i32) {
    %c0_i32 = arith.constant 0 : i32
    %c0_i32_0 = arith.constant 0 : i32
    %c0_i32_1 = arith.constant 0 : i32
    return %c0_i32, %c0_i32_0 : i32, i32
  }
  func.func @transform_6(%arg0: i32) -> (i32, i32) {
    %c0_i32 = arith.constant 0 : i32
    %c0_i32_0 = arith.constant 0 : i32
    %c0_i32_1 = arith.constant 0 : i32
    return %c0_i32, %c0_i32_0 : i32, i32
  }
  func.func @transform_7(%arg0: i32) -> (i32, i32) {
    %c0_i32 = arith.constant 0 : i32
    %c0_i32_0 = arith.constant 0 : i32
    %c0_i32_1 = arith.constant 0 : i32
    return %c0_i32, %c0_i32_0 : i32, i32
  }
  func.func @transform_8(%arg0: i32) -> (i32, i32) {
    %c0_i32 = arith.constant 0 : i32
    %c0_i32_0 = arith.constant 0 : i32
    %c0_i32_1 = arith.constant 0 : i32
    return %c0_i32, %c0_i32_0 : i32, i32
  }
  func.func @transform_9(%arg0: i32) -> (i32, i32) {
    %c0_i32 = arith.constant 0 : i32
    %c0_i32_0 = arith.constant 0 : i32
    %c0_i32_1 = arith.constant 0 : i32
    return %c0_i32, %c0_i32_0 : i32, i32
  }
  func.func @transform_10(%arg0: i32) -> (i32, i32) {
    %c0_i32 = arith.constant 0 : i32
    %c0_i32_0 = arith.constant 0 : i32
    %c0_i32_1 = arith.constant 0 : i32
    return %c0_i32, %c0_i32_0 : i32, i32
  }
  func.func @transform_11(%arg0: i32) -> (i32, i32) {
    %c0_i32 = arith.constant 0 : i32
    %c0_i32_0 = arith.constant 0 : i32
    %c0_i32_1 = arith.constant 0 : i32
    return %c0_i32, %c0_i32_0 : i32, i32
  }
  func.func @transform_12(%arg0: i32) -> (i32, i32) {
    %c0_i32 = arith.constant 0 : i32
    %c0_i32_0 = arith.constant 0 : i32
    %c0_i32_1 = arith.constant 0 : i32
    return %c0_i32, %c0_i32_0 : i32, i32
  }
  func.func @transform_13(%arg0: i32) -> (i32, i32) {
    %c0_i32 = arith.constant 0 : i32
    %c0_i32_0 = arith.constant 0 : i32
    %c0_i32_1 = arith.constant 0 : i32
    return %c0_i32, %c0_i32_0 : i32, i32
  }
  func.func @transform_14(%arg0: i32) -> (i32, i32) {
    %c0_i32 = arith.constant 0 : i32
    %c0_i32_0 = arith.constant 0 : i32
    %c0_i32_1 = arith.constant 0 : i32
    return %c0_i32, %c0_i32_0 : i32, i32
  }
  func.func @transform_15(%arg0: i32) -> (i32, i32) {
    %c0_i32 = arith.constant 0 : i32
    %c0_i32_0 = arith.constant 0 : i32
    %c0_i32_1 = arith.constant 0 : i32
    return %c0_i32, %c0_i32_0 : i32, i32
  }
  func.func @transform_16(%arg0: i32) -> (i32, i32) {
    %c0_i32 = arith.constant 0 : i32
    %c0_i32_0 = arith.constant 0 : i32
    %c0_i32_1 = arith.constant 0 : i32
    return %c0_i32, %c0_i32_0 : i32, i32
  }
  func.func @transform_17(%arg0: i32) -> (i32, i32) {
    %c0_i32 = arith.constant 0 : i32
    %c0_i32_0 = arith.constant 0 : i32
    %c0_i32_1 = arith.constant 0 : i32
    return %c0_i32, %c0_i32_0 : i32, i32
  }
  func.func @transform_18(%arg0: i32) -> (i32, i32) {
    %c0_i32 = arith.constant 0 : i32
    %c0_i32_0 = arith.constant 0 : i32
    %c0_i32_1 = arith.constant 0 : i32
    return %c0_i32, %c0_i32_0 : i32, i32
  }
  func.func @transform_19(%arg0: i32) -> (i32, i32) {
    %c0_i32 = arith.constant 0 : i32
    %c0_i32_0 = arith.constant 0 : i32
    return %arg0, %c0_i32 : i32, i32
  }
}

</mosaic_0001>

<bundles_post_ra>
// kernel: tpu_custom_call.1
= control target key start
LH: loop header
LB: loop body
LE: loop exit
PB: predicated region body
PF: predicated region fallthrough
CT: control target
= control target key end

     0   :  { %s1691_s0 = inlined_call_operand.vmem [shape: f32[8,4], index: 0, kind: input, shape index: {}]   ;;  %s1692_s1 = inlined_call_operand.hbm [shape: f32[4,32], index: 1, kind: input, shape index: {}]   ;;  %s1693_s2 = inlined_call_operand.hbm [shape: f32[1,32], index: 2, kind: input, shape index: {}]   ;;  %s1694_s3 = inlined_call_operand.vmem [shape: f32[32,32], index: 3, kind: input, shape index: {}]   ;;  %s1695_s4 = inlined_call_operand.hbm [shape: f32[1,32], index: 4, kind: input, shape index: {}]   ;;  %s1696_s5 = inlined_call_operand.hbm [shape: f32[32,32], index: 5, kind: input, shape index: {}]   ;;  %s1697_s6 = inlined_call_operand.hbm [shape: f32[1,32], index: 6, kind: input, shape index: {}]   ;;  %s1698_s7 = inlined_call_operand.vmem [shape: f32[32,32], index: 7, kind: input, shape index: {}]   ;;  %s1699_s8 = inlined_call_operand.hbm [shape: f32[1,32], index: 8, kind: input, shape index: {}]   ;;  %s1700_s9 = inlined_call_operand.hbm [shape: f32[32,32], index: 9, kind: input, shape index: {}]   ;;  %s1701_s10 = inlined_call_operand.hbm [shape: f32[1,32], index: 10, kind: input, shape index: {}]   ;;  %s1702_s11 = inlined_call_operand.hbm [shape: f32[32,32], index: 11, kind: input, shape index: {}]   ;;  %s1703_s12 = inlined_call_operand.vmem [shape: f32[1,32], index: 12, kind: input, shape index: {}]   ;;  %s1704_s13 = inlined_call_operand.hbm [shape: f32[32,32], index: 13, kind: input, shape index: {}]   ;;  %s1705_s14 = inlined_call_operand.vmem [shape: f32[1,32], index: 14, kind: input, shape index: {}]   ;;  %s1706_s15 = inlined_call_operand.hbm [shape: f32[32,32], index: 15, kind: input, shape index: {}]   ;;  %s1707_s16 = inlined_call_operand.vmem [shape: f32[1,32], index: 16, kind: input, shape index: {}]   ;;  %s1708_s17 = inlined_call_operand.vmem [shape: f32[32,8], index: 17, kind: input, shape index: {}]   ;;  %s1709_s18 = inlined_call_operand.vmem [shape: f32[1,8], index: 18, kind: input, shape index: {}]   ;;  %s1710_s19 = inlined_call_operand.hbm [shape: f32[8,8], index: 19, kind: output, shape index: {}]  }
   0x1   :  { %1712 = sst [smem:[#allocation28_spill]] %s1691_s0 }
   0x2   :  { %1713 = sst [smem:[#allocation29_spill]] %s1692_s1 }
   0x3   :  { %1714 = sst [smem:[#allocation30_spill]] %s1693_s2 }
   0x4   :  { %1715 = sst [smem:[#allocation31_spill]] %s1694_s3 }
   0x5   :  { %24 = vsyncpa [#allocation3], 0 }
   0x6   :  { %25 = vsyncpa [#allocation6], 0 }
   0x7   :  { %26 = vsyncpa [#allocation9], 0 }
   0x8   :  { %27 = vsyncpa [#allocation12], 0 }
   0x9   :  { %28 = vsyncpa [#allocation15], 0 }
   0xa   :  { %29 = vsyncpa [#allocation18], 0 }
   0xb   :  { %30 = vsyncpa [#allocation4], 0  ;;  %s1414_s0 = smov [#allocation5]   ;;  %s1415_s20 = smov [#allocation8]  }
   0xc   :  { %s49_s30 = sshll.u32 %s1414_s0, 4  ;;  %s70_s21 = sshll.u32 %s1415_s20, 4  ;;  %s50_s30 = int_to_ptr.vmem [resolvable:$true] %s49_s30  ;;  %s71_s21 = int_to_ptr.vmem [resolvable:$true] %s70_s21 }
   0xd   :  { %s1168_s1 = scalar_lea.vmem %s50_s30, 16  ;;  %s1172_s22 = scalar_lea.vmem %s50_s30, 32 }
   0xe   :  { %p1169_p0 = scmp.ne.s32.totalorder %s50_s30, %s1168_s1  ;;  %p1173_p1 = scmp.lt.s32.totalorder %s50_s30, %s50_s30 }
   0xf   :  { %p1174_p2 = scmp.lt.s32.totalorder %s1172_s22, %s1168_s1 }
  0x11   :  { %p1175_p3 = por %p1174_p2, %p1173_p1 }
  0x13   :  { %p1176_p4 = pnand %p1175_p3, %p1169_p0 }
  0x15   :  { %1179 = shalt.err (!%p1176_p4)
}
  0x16   :  { %s1716_s24 = sld [smem:[#allocation30_spill]]  ;;  %s1188_s25 = scalar_lea.vmem %s71_s21, 512 }
  0x17   :  { %p1189_p5 = scmp.ne.s32.totalorder %s71_s21, %s1188_s25  ;;  %p1193_p6 = scmp.lt.s32.totalorder %s71_s21, %s71_s21 }
  0x18   :  { %p1194_p7 = scmp.lt.s32.totalorder %s1188_s25, %s1188_s25 }
  0x1a   :  { %p1195_p8 = por %p1194_p7, %p1193_p6 }
  0x1c   :  { %52 = dma.hbm_to_vmem [thread:$0]  %s1716_s24, 16, %s50_s30, [#allocation6]  }
  0x1d   :  { %p1196_p9 = pnand %p1195_p8, %p1189_p5 }
  0x1f   :  { %1199 = shalt.err (!%p1196_p9)
}
  0x20   :  { %s1416_s3 = smov 128   ;;  %s1417_s26 = smov 8  }
  0x21   :  { %76 = dma.hbm_to_vmem [thread:$0]  %s1696_s5, 512, %s71_s21, [#allocation9], %s1416_s3, %s1416_s3, %s1417_s26  }
  0x22   :  { %s1418_s29 = smov [#allocation11]   ;;  %s1419_s20 = smov [#allocation14]  }
  0x23   :  { %s95_s0 = sshll.u32 %s1418_s29, 4  ;;  %s117_s30 = sshll.u32 %s1419_s20, 4  ;;  %s96_s0 = int_to_ptr.vmem [resolvable:$true] %s95_s0  ;;  %s118_s30 = int_to_ptr.vmem [resolvable:$true] %s117_s30 }
  0x24   :  { %s1208_s1 = scalar_lea.vmem %s96_s0, 16  ;;  %s1212_s22 = scalar_lea.vmem %s96_s0, 32 }
  0x25   :  { %p1209_p10 = scmp.ne.s32.totalorder %s96_s0, %s1208_s1  ;;  %p1213_p11 = scmp.lt.s32.totalorder %s96_s0, %s96_s0 }
  0x26   :  { %p1214_p12 = scmp.lt.s32.totalorder %s1212_s22, %s1208_s1 }
  0x28   :  { %p1215_p13 = por %p1214_p12, %p1213_p11 }
  0x2a   :  { %p1216_p0 = pnand %p1215_p13, %p1209_p10 }
  0x2c   :  { %1219 = shalt.err (!%p1216_p0)
}
  0x2d   :  { %98 = dma.hbm_to_vmem [thread:$0]  %s1699_s8, 16, %s96_s0, [#allocation12]  }
  0x2e   :  { %s1228_s24 = scalar_lea.vmem %s118_s30, 16  ;;  %s1232_s5 = scalar_lea.vmem %s118_s30, 32 }
  0x2f   :  { %p1229_p1 = scmp.ne.s32.totalorder %s118_s30, %s1228_s24  ;;  %p1233_p2 = scmp.lt.s32.totalorder %s118_s30, %s118_s30 }
  0x30   :  { %p1234_p3 = scmp.lt.s32.totalorder %s1232_s5, %s1228_s24 }
  0x32   :  { %p1235_p4 = por %p1234_p3, %p1233_p2 }
  0x34   :  { %p1236_p5 = pnand %p1235_p4, %p1229_p1 }
  0x36   :  { %1239 = shalt.err (!%p1236_p5)
}
  0x37   :  { %120 = dma.hbm_to_vmem [thread:$0]  %s1701_s10, 16, %s118_s30, [#allocation15]  }
  0x38   :  { %s1420_s27 = smov [#allocation17]   ;;  %s1421_s29 = smov [#allocation2]  }
  0x39   :  { %s140_s28 = sshll.u32 %s1420_s27, 4  ;;  %s39_s20 = sshll.u32 %s1421_s29, 4  ;;  %s141_s28 = int_to_ptr.vmem [resolvable:$true] %s140_s28  ;;  %s40_s20 = int_to_ptr.vmem [resolvable:$true] %s39_s20 }
  0x3a   :  { %s1248_s1 = scalar_lea.vmem %s141_s28, 512  ;;  %p1253_p7 = scmp.lt.s32.totalorder %s141_s28, %s141_s28 }
  0x3b   :  { %p1249_p6 = scmp.ne.s32.totalorder %s141_s28, %s1248_s1  ;;  %p1254_p8 = scmp.lt.s32.totalorder %s1248_s1, %s1248_s1 }
  0x3d   :  { %p1255_p9 = por %p1254_p8, %p1253_p7 }
  0x3f   :  { %p1256_p10 = pnand %p1255_p9, %p1249_p6 }
  0x41   :  { %1259 = shalt.err (!%p1256_p10)
}
  0x42   :  { %146 = dma.hbm_to_vmem [thread:$0]  %s1704_s13, 512, %s141_s28, [#allocation18], %s1416_s3, %s1416_s3, %s1417_s26  }
  0x43   :  { %s1268_s10 = scalar_lea.vmem %s40_s20, 64  ;;  %p1273_p12 = scmp.lt.s32.totalorder %s40_s20, %s40_s20 }
  0x44   :  { %p1269_p11 = scmp.ne.s32.totalorder %s40_s20, %s1268_s10  ;;  %p1274_p13 = scmp.lt.s32.totalorder %s1268_s10, %s1268_s10 }
  0x46   :  { %p1275_p0 = por %p1274_p13, %p1273_p12 }
  0x48   :  { %p1276_p1 = pnand %p1275_p0, %p1269_p11 }
  0x4a   :  { %1279 = shalt.err (!%p1276_p1)
}
  0x4b   :  { %s1717_s2 = sld [smem:[#allocation29_spill]]  ;;  %s1422_s23 = smov [#allocation7]  }
  0x4c   :  { %s61_s24 = sshll.u32 %s1422_s23, 4  ;;  %s1423_s5 = smov [#allocation10]   ;;  %s62_s24 = int_to_ptr.vmem [resolvable:$true] %s61_s24 }
  0x4d   :  { %s83_s21 = sshll.u32 %s1423_s5, 4  ;;  %s1288_s25 = scalar_lea.vmem %s62_s24, 16  ;;  %s84_s21 = int_to_ptr.vmem [resolvable:$true] %s83_s21 }
  0x4e   :  { %p1289_p2 = scmp.ne.s32.totalorder %s62_s24, %s1288_s25  ;;  %s1292_s13 = scalar_lea.vmem %s62_s24, 32 }
  0x4f   :  { %p1293_p3 = scmp.lt.s32.totalorder %s62_s24, %s62_s24  ;;  %p1294_p4 = scmp.lt.s32.totalorder %s1292_s13, %s1288_s25 }
  0x51   :  { %42 = dma.hbm_to_vmem [thread:$0]  %s1717_s2, 64, %s40_s20, [#allocation3]  }
  0x52   :  { %p1295_p5 = por %p1294_p4, %p1293_p3 }
  0x54   :  { %p1296_p6 = pnand %p1295_p5, %p1289_p2 }
  0x56   :  { %1299 = shalt.err (!%p1296_p6)
}
  0x57   :  { %64 = dma.hbm_to_vmem [thread:$0]  %s1695_s4, 16, %s62_s24, [#allocation6]  }
  0x58   :  { %s1308_s29 = scalar_lea.vmem %s84_s21, 16  ;;  %s1312_s20 = scalar_lea.vmem %s84_s21, 32 }
  0x59   :  { %p1309_p7 = scmp.ne.s32.totalorder %s84_s21, %s1308_s29  ;;  %p1313_p8 = scmp.lt.s32.totalorder %s84_s21, %s84_s21 }
  0x5a   :  { %p1314_p9 = scmp.lt.s32.totalorder %s1312_s20, %s1308_s29 }
  0x5c   :  { %p1315_p10 = por %p1314_p9, %p1313_p8 }
  0x5e   :  { %p1316_p11 = pnand %p1315_p10, %p1309_p7 }
  0x60   :  { %1319 = shalt.err (!%p1316_p11)
}
  0x61   :  { %86 = dma.hbm_to_vmem [thread:$0]  %s1697_s6, 16, %s84_s21, [#allocation9]  }
  0x62   :  { %s1424_s0 = smov [#allocation13]   ;;  %s1425_s30 = smov [#allocation16]  }
  0x63   :  { %s104_s10 = sshll.u32 %s1424_s0, 4  ;;  %s126_s22 = sshll.u32 %s1425_s30, 4  ;;  %s105_s10 = int_to_ptr.vmem [resolvable:$true] %s104_s10  ;;  %s127_s22 = int_to_ptr.vmem [resolvable:$true] %s126_s22 }
  0x64   :  { %s1328_s2 = scalar_lea.vmem %s105_s10, 512  ;;  %p1333_p13 = scmp.lt.s32.totalorder %s105_s10, %s105_s10 }
  0x65   :  { %p1329_p12 = scmp.ne.s32.totalorder %s105_s10, %s1328_s2  ;;  %p1334_p0 = scmp.lt.s32.totalorder %s1328_s2, %s1328_s2 }
  0x67   :  { %p1335_p1 = por %p1334_p0, %p1333_p13 }
  0x69   :  { %p1336_p2 = pnand %p1335_p1, %p1329_p12 }
  0x6b   :  { %1339 = shalt.err (!%p1336_p2)
}
  0x6c   :  { %110 = dma.hbm_to_vmem [thread:$0]  %s1700_s9, 512, %s105_s10, [#allocation12], %s1416_s3, %s1416_s3, %s1417_s26  }
  0x6d   :  { %s1348_s6 = scalar_lea.vmem %s127_s22, 512  ;;  %p1353_p4 = scmp.lt.s32.totalorder %s127_s22, %s127_s22 }
  0x6e   :  { %p1349_p3 = scmp.ne.s32.totalorder %s127_s22, %s1348_s6  ;;  %p1354_p5 = scmp.lt.s32.totalorder %s1348_s6, %s1348_s6 }
  0x70   :  { %p1355_p6 = por %p1354_p5, %p1353_p4 }
  0x72   :  { %p1356_p7 = pnand %p1355_p6, %p1349_p3 }
  0x74   :  { %1359 = shalt.err (!%p1356_p7)
}
  0x75   :  { %132 = dma.hbm_to_vmem [thread:$0]  %s1702_s11, 512, %s127_s22, [#allocation15], %s1416_s3, %s1416_s3, %s1417_s26  }
  0x76   :  { %s1426_s21 = smov [#allocation19]  }
  0x77   :  { %s154_s25 = sshll.u32 %s1426_s21, 4  ;;  %s155_s25 = int_to_ptr.vmem [resolvable:$true] %s154_s25 }
  0x78   :  { %s1368_s13 = scalar_lea.vmem %s155_s25, 512  ;;  %p1373_p9 = scmp.lt.s32.totalorder %s155_s25, %s155_s25 }
  0x79   :  { %p1369_p8 = scmp.ne.s32.totalorder %s155_s25, %s1368_s13  ;;  %p1374_p10 = scmp.lt.s32.totalorder %s1368_s13, %s1368_s13 }
  0x7b   :  { %p1375_p11 = por %p1374_p10, %p1373_p9 }
  0x7d   :  { %p1376_p12 = pnand %p1375_p11, %p1369_p8 }
  0x7f   :  { %1379 = shalt.err (!%p1376_p12)
}
  0x80   :  { %160 = dma.hbm_to_vmem [thread:$0]  %s1706_s15, 512, %s155_s25, [#allocation18], %s1416_s3, %s1416_s3, %s1417_s26  }
  0x81   :  { %1400 = dma.done.wait [#allocation3], 64  }
  0x82   :  { %1401 = vsyncadd [#allocation3], 4294967232 }
  0x83   :  { %1402 = dma.done.wait [#allocation6], 32  }
  0x84   :  { %1403 = vsyncadd [#allocation6], 4294967264 }
  0x85   :  { %1404 = dma.done.wait [#allocation9], 528  }
  0x86   :  { %1405 = vsyncadd [#allocation9], 4294966768 }
  0x87   :  { %1406 = dma.done.wait [#allocation12], 528  }
  0x88   :  { %1407 = vsyncadd [#allocation12], 4294966768 }
  0x89   :  { %1408 = dma.done.wait [#allocation15], 528  }
  0x8a   :  { %1409 = vsyncadd [#allocation15], 4294966768 }
  0x8b   :  { %1410 = dma.done.wait [#allocation18], 1024  }
  0x8c   :  { %1411 = vsyncadd [#allocation18], 4294966272  ;;  %v1427_v0 = vmov 0.0   ;;  %vm1428_vm0 = vmmov 0   ;;  %vm213_vm1 = vcmask 1043456   ;;  %vm209_vm2 = vcmask 31744  }
  0x8d   :  { %1051 = vmatprep.subr.mxu0 %v1427_v0  ;;  %1053 = vmatprep.mubr.msk.f32.mxu0 %vm1428_vm0, %v1427_v0  ;;  %v201_v1 = vld [vmem:[#allocation2] sm:$0xf]  ;;  %s1718_s3 = sld [smem:[#allocation28_spill]]  ;;  %v990_v8 = vld [vmem:[#allocation5] ss:$0 sm:$0xff]  ;;  %vm299_vm3 = vcmask 261120  }
  0x8e   :  { %1056 = vmatprep.subr.mxu1 %v1427_v0  ;;  %1064 = vmatprep.mubr.msk.f32.mxu1 %vm1428_vm0, %v1427_v0  ;;  %s1719_s29 = sld [smem:[#allocation31_spill]]  ;;  %v377_v7 = vld [vmem:[#allocation8 + $0x18] sm:$0xff]  ;;  %v376_v13 = vld [vmem:[#allocation8 + $0x10] sm:$0xff]  ;;  %v375_v14 = vld [vmem:[#allocation8 + $0x8] sm:$0xff]  ;;  %s1429_s0 = smov [#allocation20]   ;;  %vm968_vm4 = vcmask 64512  }
  0x8f   :  { %1052 = vmatpush3.msk.msra.mxu0 %vm213_vm1, %v201_v1  ;;  %v374_v15 = vld [vmem:[#allocation8] sm:$0xff]  ;;  %v462_v16 = vld [vmem:[%s1698_s7 + $0x18] sm:$0xff]  ;;  %v993_v17 = vld [vmem:[#allocation7] ss:$0 sm:$0xff]  ;;  %s976_s10 = sshll.u32 %s1429_s0, 4  ;;  %s977_s10 = int_to_ptr.vmem [resolvable:$true] %s976_s10 }
  0x90   :  { %1067 = vmatprep.subr.mxu0 %v1427_v0  ;;  %v461_v22 = vld [vmem:[%s1698_s7 + $0x10] sm:$0xff]  ;;  %v460_v23 = vld [vmem:[%s1698_s7 + $0x8] sm:$0xff]  ;;  %v459_v24 = vld [vmem:[%s1698_s7] sm:$0xff]  ;;  %p1385_p0 = scmp.lt.s32.totalorder %s977_s10, %s977_s10 }
  0x91   :  { %v547_v25 = vld [vmem:[#allocation13 + $0x18] sm:$0xff]  ;;  %v546_v31 = vld [vmem:[#allocation13 + $0x10] sm:$0xff]  ;;  %v545_v32 = vld [vmem:[#allocation13 + $0x8] sm:$0xff] }
  0x92   :  { %v995_v26 = vld [vmem:[#allocation10] ss:$0 sm:$0xff]  ;;  %v544_v33 = vld [vmem:[#allocation13] sm:$0xff]  ;;  %v997_v35 = vld [vmem:[#allocation11] ss:$0 sm:$0xff] }
  0x93   :  { %v200_v2 = vld [vmem:[%s1718_s3] sm:$0xff]  ;;  %v630_v41 = vld [vmem:[#allocation16 + $0x8] sm:$0xff]  ;;  %v629_v42 = vld [vmem:[#allocation16] sm:$0xff] }
  0x94   :  { %v291_v3 = vld [vmem:[%s1719_s29 + $0x18] sm:$0xff]  ;;  %1054 = vmatmul.mubr.msk.f32.vlgmr.msra.gmra.mxu0 %vm209_vm2, %v200_v2  ;;  %v290_v4 = vld [vmem:[%s1719_s29 + $0x10] sm:$0xff]  ;;  %v289_v5 = vld [vmem:[%s1719_s29 + $0x8] sm:$0xff] }
  0x95   :  { %1057 = vmatpush3.msra.mxu1 %v291_v3  ;;  %1075 = vmatprep.mubr.msk.f32.mxu0 %vm1428_vm0, %v1427_v0  ;;  %v288_v6 = vld [vmem:[%s1719_s29] sm:$0xff]  ;;  %v999_v44 = vld [vmem:[#allocation14] ss:$0 sm:$0xff]  ;;  %v715_v50 = vld [vmem:[#allocation17 + $0x8] sm:$0xff] }
  0x96   :  { %1058 = vmatprep.subr.mxu1 %v1427_v0  ;;  %1068 = vmatpush3.msra.mxu0 %v377_v7  ;;  %v632_v34 = vld [vmem:[#allocation16 + $0x18] sm:$0xff]  ;;  %v631_v40 = vld [vmem:[#allocation16 + $0x10] sm:$0xff]  ;;  %v714_v51 = vld [vmem:[#allocation17] sm:$0xff] }
  0x97   :  { %1059 = vmatpush3.msra.mxu1 %v290_v4  ;;  %1069 = vmatprep.subr.mxu0 %v1427_v0  ;;  %v717_v43 = vld [vmem:[#allocation17 + $0x18] sm:$0xff]  ;;  %v716_v49 = vld [vmem:[#allocation17 + $0x10] sm:$0xff]  ;;  %v800_v59 = vld [vmem:[#allocation19 + $0x8] sm:$0xff] }
  0x98   :  { %1060 = vmatprep.subr.mxu1 %v1427_v0  ;;  %1070 = vmatpush3.msra.mxu0 %v376_v13  ;;  %v802_v52 = vld [vmem:[#allocation19 + $0x18] sm:$0xff]  ;;  %v1001_v53 = vld [vmem:[%s1703_s12] ss:$0 sm:$0xff]  ;;  %v799_v60 = vld [vmem:[#allocation19] sm:$0xff] }
  0x99   :  { %1061 = vmatpush3.msra.mxu1 %v289_v5  ;;  %1071 = vmatprep.subr.mxu0 %v1427_v0  ;;  %v801_v58 = vld [vmem:[#allocation19 + $0x10] sm:$0xff]  ;;  %v886_v4 = vld [vmem:[%s1708_s17 + $0x10] sm:$0xff]  ;;  %v885_v5 = vld [vmem:[%s1708_s17 + $0x8] sm:$0xff] }
  0x9a   :  { %1062 = vmatprep.subr.mxu1 %v1427_v0  ;;  %1072 = vmatpush3.msra.mxu0 %v375_v14  ;;  %v887_v61 = vld [vmem:[%s1708_s17 + $0x18] sm:$0xff]  ;;  %v1003_v62 = vld [vmem:[%s1705_s14] ss:$0 sm:$0xff] }
  0x9b   :  { %1063 = vmatpush3.msra.mxu1 %v288_v6  ;;  %1073 = vmatprep.subr.mxu0 %v1427_v0  ;;  %v884_v6 = vld [vmem:[%s1708_s17] sm:$0xff]  ;;  %s1380_s17 = scalar_lea.vmem %s977_s10, 128 }
  0x9c   :  { %1078 = vmatprep.subr.mxu1 %v1427_v0  ;;  %1074 = vmatpush3.msra.mxu0 %v374_v15  ;;  %v1005_v7 = vld [vmem:[%s1707_s16] ss:$0 sm:$0xff]  ;;  %p1381_p13 = scmp.ne.s32.totalorder %s977_s10, %s1380_s17  ;;  %p1386_p1 = scmp.lt.s32.totalorder %s1380_s17, %s1380_s17 }
  0x9d   :  { %1089 = vmatprep.subr.mxu0 %v1427_v0 }
  0x9e   :  { %p1387_p2 = por %p1386_p1, %p1385_p0 }
  0xa0   :  { %p1388_p3 = pnand %p1387_p2, %p1381_p13 }
 0x154   :  { %v283_v9 = vpop.f32.mrf.mxu0 }
 0x155   :  { %v284_v10 = vadd.f32 %v990_v8, %v283_v9 }
 0x156   :  { %v1055_v11 = vpop.f32.mrf.mxu0 }
 0x157   :  { %v287_v12 = vmax.f32 %v284_v10, 0.0 }
 0x159   :  { %1065 = vmatmul.mubr.msk.f32.vlgmr.msra.gmra.mxu1 %vm299_vm3, %v287_v12  ;;  %v1007_v12 = vld [vmem:[%s1709_s18] ss:$0 sm:$0xff] }
 0x15a   :  { %1086 = vmatprep.mubr.msk.f32.mxu1 %vm1428_vm0, %v1427_v0  ;;  %1079 = vmatpush3.msra.mxu1 %v462_v16 }
 0x15b   :  { %1080 = vmatprep.subr.mxu1 %v1427_v0 }
 0x15c   :  { %1081 = vmatpush3.msra.mxu1 %v461_v22 }
 0x15d   :  { %1082 = vmatprep.subr.mxu1 %v1427_v0 }
 0x15e   :  { %1083 = vmatpush3.msra.mxu1 %v460_v23 }
 0x15f   :  { %1084 = vmatprep.subr.mxu1 %v1427_v0 }
 0x160   :  { %1085 = vmatpush3.msra.mxu1 %v459_v24 }
 0x161   :  { %1100 = vmatprep.subr.mxu1 %v1427_v0 }
 0x219   :  { %v369_v18 = vpop.f32.mrf.mxu1 }
 0x21a   :  { %v370_v19 = vadd.f32 %v993_v17, %v369_v18 }
 0x21b   :  { %v1066_v20 = vpop.f32.mrf.mxu1 }
 0x21c   :  { %v373_v21 = vmax.f32 %v370_v19, 0.0 }
 0x21e   :  { %1076 = vmatmul.mubr.msk.f32.vlgmr.msra.gmra.mxu0 %vm299_vm3, %v373_v21 }
 0x21f   :  { %1097 = vmatprep.mubr.msk.f32.mxu0 %vm1428_vm0, %v1427_v0  ;;  %1090 = vmatpush3.msra.mxu0 %v547_v25 }
 0x220   :  { %1091 = vmatprep.subr.mxu0 %v1427_v0 }
 0x221   :  { %1092 = vmatpush3.msra.mxu0 %v546_v31 }
 0x222   :  { %1093 = vmatprep.subr.mxu0 %v1427_v0 }
 0x223   :  { %1094 = vmatpush3.msra.mxu0 %v545_v32 }
 0x224   :  { %1095 = vmatprep.subr.mxu0 %v1427_v0 }
 0x225   :  { %1096 = vmatpush3.msra.mxu0 %v544_v33 }
 0x226   :  { %1111 = vmatprep.subr.mxu0 %v1427_v0 }
 0x2de   :  { %v454_v27 = vpop.f32.mrf.mxu0 }
 0x2df   :  { %v455_v28 = vadd.f32 %v995_v26, %v454_v27 }
 0x2e0   :  { %v1077_v29 = vpop.f32.mrf.mxu0 }
 0x2e1   :  { %v458_v30 = vmax.f32 %v455_v28, 0.0 }
 0x2e3   :  { %1087 = vmatmul.mubr.msk.f32.vlgmr.msra.gmra.mxu1 %vm299_vm3, %v458_v30 }
 0x2e4   :  { %1108 = vmatprep.mubr.msk.f32.mxu1 %vm1428_vm0, %v1427_v0  ;;  %1101 = vmatpush3.msra.mxu1 %v632_v34 }
 0x2e5   :  { %1102 = vmatprep.subr.mxu1 %v1427_v0 }
 0x2e6   :  { %1103 = vmatpush3.msra.mxu1 %v631_v40 }
 0x2e7   :  { %1104 = vmatprep.subr.mxu1 %v1427_v0 }
 0x2e8   :  { %1105 = vmatpush3.msra.mxu1 %v630_v41 }
 0x2e9   :  { %1106 = vmatprep.subr.mxu1 %v1427_v0 }
 0x2ea   :  { %1107 = vmatpush3.msra.mxu1 %v629_v42 }
 0x2eb   :  { %1122 = vmatprep.subr.mxu1 %v1427_v0 }
 0x3a3   :  { %v539_v36 = vpop.f32.mrf.mxu1 }
 0x3a4   :  { %v540_v37 = vadd.f32 %v997_v35, %v539_v36 }
 0x3a5   :  { %v1088_v38 = vpop.f32.mrf.mxu1 }
 0x3a6   :  { %v543_v39 = vmax.f32 %v540_v37, 0.0 }
 0x3a8   :  { %1098 = vmatmul.mubr.msk.f32.vlgmr.msra.gmra.mxu0 %vm299_vm3, %v543_v39 }
 0x3a9   :  { %1119 = vmatprep.mubr.msk.f32.mxu0 %vm1428_vm0, %v1427_v0  ;;  %1112 = vmatpush3.msra.mxu0 %v717_v43 }
 0x3aa   :  { %1113 = vmatprep.subr.mxu0 %v1427_v0 }
 0x3ab   :  { %1114 = vmatpush3.msra.mxu0 %v716_v49 }
 0x3ac   :  { %1115 = vmatprep.subr.mxu0 %v1427_v0 }
 0x3ad   :  { %1116 = vmatpush3.msra.mxu0 %v715_v50 }
 0x3ae   :  { %1117 = vmatprep.subr.mxu0 %v1427_v0 }
 0x3af   :  { %1118 = vmatpush3.msra.mxu0 %v714_v51 }
 0x3b0   :  { %1133 = vmatprep.subr.mxu0 %v1427_v0 }
 0x468   :  { %v624_v45 = vpop.f32.mrf.mxu0 }
 0x469   :  { %v625_v46 = vadd.f32 %v999_v44, %v624_v45 }
 0x46a   :  { %v1099_v47 = vpop.f32.mrf.mxu0 }
 0x46b   :  { %v628_v48 = vmax.f32 %v625_v46, 0.0 }
 0x46d   :  { %1109 = vmatmul.mubr.msk.f32.vlgmr.msra.gmra.mxu1 %vm299_vm3, %v628_v48 }
 0x46e   :  { %1130 = vmatprep.mubr.msk.f32.mxu1 %vm1428_vm0, %v1427_v0  ;;  %1123 = vmatpush3.msra.mxu1 %v802_v52 }
 0x46f   :  { %1124 = vmatprep.subr.mxu1 %v1427_v0 }
 0x470   :  { %1125 = vmatpush3.msra.mxu1 %v801_v58 }
 0x471   :  { %1126 = vmatprep.subr.mxu1 %v1427_v0 }
 0x472   :  { %1127 = vmatpush3.msra.mxu1 %v800_v59 }
 0x473   :  { %1128 = vmatprep.subr.mxu1 %v1427_v0 }
 0x474   :  { %1129 = vmatpush3.msra.mxu1 %v799_v60 }
 0x52d   :  { %v709_v54 = vpop.f32.mrf.mxu1 }
 0x52e   :  { %v710_v55 = vadd.f32 %v1001_v53, %v709_v54 }
 0x52f   :  { %v1110_v56 = vpop.f32.mrf.mxu1 }
 0x530   :  { %v713_v57 = vmax.f32 %v710_v55, 0.0 }
 0x532   :  { %1120 = vmatmul.mubr.msk.f32.vlgmr.msra.gmra.mxu0 %vm299_vm3, %v713_v57 }
 0x533   :  { %1141 = vmatprep.mubr.msk.f32.mxu0 %vm1428_vm0, %v1427_v0  ;;  %1134 = vmatpush3.msra.mxu0 %v887_v61 }
 0x534   :  { %1135 = vmatprep.subr.mxu0 %v1427_v0 }
 0x535   :  { %1136 = vmatpush3.msra.mxu0 %v886_v4 }
 0x536   :  { %1137 = vmatprep.subr.mxu0 %v1427_v0 }
 0x537   :  { %1138 = vmatpush3.msra.mxu0 %v885_v5 }
 0x538   :  { %1139 = vmatprep.subr.mxu0 %v1427_v0 }
 0x539   :  { %1140 = vmatpush3.msra.mxu0 %v884_v6 }
 0x5f2   :  { %v794_v63 = vpop.f32.mrf.mxu0 }
 0x5f3   :  { %v795_v1 = vadd.f32 %v1003_v62, %v794_v63 }
 0x5f4   :  { %v1121_v2 = vpop.f32.mrf.mxu0 }
 0x5f5   :  { %v798_v3 = vmax.f32 %v795_v1, 0.0 }
 0x5f7   :  { %1131 = vmatmul.mubr.msk.f32.vlgmr.msra.gmra.mxu1 %vm299_vm3, %v798_v3 }
 0x6b7   :  { %v879_v8 = vpop.f32.mrf.mxu1 }
 0x6b8   :  { %v880_v9 = vadd.f32 %v1005_v7, %v879_v8 }
 0x6b9   :  { %v1132_v10 = vpop.f32.mrf.mxu1 }
 0x6ba   :  { %v883_v11 = vmax.f32 %v880_v9, 0.0 }
 0x6bc   :  { %1142 = vmatmul.mubr.msk.f32.vlgmr.msra.gmra.mxu0 %vm299_vm3, %v883_v11 }
 0x77c   :  { %v964_v0 = vpop.f32.mrf.mxu0 }
 0x77d   :  { %v965_v13 = vadd.f32 %v1007_v12, %v964_v0 }
 0x77e   :  { %v1143_v14 = vpop.f32.mrf.mxu0 }
 0x77f   :  { %969 = vst.msk [vmem:[#allocation20] sm:$0xff] %vm968_vm4, %v965_v13 }
 0x780   :  { %1391 = shalt.err (!%p1388_p3)
}
 0x781   :  { %979 = dma.vmem_to_hbm [thread:$0]  %s977_s10, 128, %s1710_s19, [#allocation4]  }
 0x782   :  { %1412 = dma.done.wait [#allocation4], 128  }
 0x783   :  { %1413 = vsyncadd [#allocation4], 4294967168 }
 0x784   :  { %983 = vsyncpa [#allocation3], 1 }
 0x785   :  { %984 = vsyncpa [#allocation6], 1 }
 0x786   :  { %985 = vsyncpa [#allocation9], 1 }
 0x787   :  { %986 = vsyncpa [#allocation12], 1 }
 0x788   :  { %987 = vsyncpa [#allocation15], 1 }
 0x789   :  { %988 = vsyncpa [#allocation18], 1 }
 0x78a   :  { %989 = vsyncpa [#allocation4], 1 }

</bundles_post_ra>
